<compile_context>
chip_gen: v6e
topology: v6e:2x2x1
jax: 0.10.0
libtpu: 0.0.40
codegen_flags: <defaults>
</compile_context>

<pallas_src>
import jax
import jax.numpy as jnp
from jax.experimental import pallas as pl
from jax.experimental.pallas import tpu as pltpu

LANES = 128
MAX_BLOCK_ROWS = 1024  # 1024*128*4 B = 512 KiB f32 block (+256 KiB bf16 target block)


def _round_up(x, m):
    return ((x + m - 1) // m) * m


def _wbce_kernel(p_ref, t_ref, pos_ref, ploss_ref, tot_ref):
    # Inner grid axis (program_id(1)) is the reduction axis; the three outputs are
    # resident across it (their block index depends only on the outer chunk axis).
    @pl.when(pl.program_id(1) == 0)
    def _():
        pos_ref[...] = jnp.zeros_like(pos_ref)
        ploss_ref[...] = jnp.zeros_like(ploss_ref)
        tot_ref[...] = jnp.zeros_like(tot_ref)

    p = p_ref[...]                            # (BR, 128) f32 probabilities
    t = t_ref[...].astype(jnp.float32)        # (BR, 128) exactly {0, 1}
    is_pos = t > 0.5

    # Single log per element; PyTorch's binary_cross_entropy clamps log at -100.
    # Padded elements have p = 0, t = 0 -> loss = -log(1) = 0: contribute nothing.
    loss = -jnp.maximum(jnp.log(jnp.where(is_pos, p, 1.0 - p)), -100.0)

    pos_ref[...] += t                                  # count of positives
    ploss_ref[...] += jnp.where(is_pos, loss, 0.0)     # positive-class BCE sum
    tot_ref[...] += loss                               # total BCE sum


@jax.jit
def weighted_bce_loss(_input, target):
    """_input: (N, 1) f32 probabilities; target: (N,) f32 in {0,1}. Returns scalar."""
    p_flat = _input.reshape(-1).astype(jnp.float32)
    t_flat = target.reshape(-1)
    n = p_flat.shape[0]

    rows_needed = pl.cdiv(n, LANES)
    # Multiple of 16 so both the f32 (8,128) and bf16 (16,128) tilings divide evenly.
    block_rows = min(MAX_BLOCK_ROWS, _round_up(rows_needed, 16))
    tile_elems = block_rows * LANES
    total_tiles = pl.cdiv(n, tile_elems)
    num_chunks = 2 if total_tiles >= 2 else 1   # dual-TensorCore split (v7x); cheap elsewhere
    tiles_per_chunk = pl.cdiv(total_tiles, num_chunks)
    padded = num_chunks * tiles_per_chunk * tile_elems

    # Zero-pad the tail: p=0, t=0 padding contributes exactly zero to all accumulators.
    # TODO(synk): handle the ragged last block in-kernel (manual DMA / pl.ANY) to avoid
    # this extra fused HBM pass that materializes the padded copies.
    p2 = jnp.pad(p_flat, (0, padded - n)).reshape(-1, LANES)
    t2 = jnp.pad(t_flat.astype(jnp.bfloat16), (0, padded - n)).reshape(-1, LANES)

    acc_shape = jax.ShapeDtypeStruct((num_chunks, block_rows, LANES), jnp.float32)
    in_map = lambda c, t: (c * tiles_per_chunk + t, 0)
    out_spec = pl.BlockSpec((None, block_rows, LANES), lambda c, t: (c, 0, 0))

    pos_p, ploss_p, tot_p = pl.pallas_call(
        _wbce_kernel,
        out_shape=(acc_shape, acc_shape, acc_shape),
        grid_spec=pltpu.PrefetchScalarGridSpec(
            num_scalar_prefetch=0,
            grid=(num_chunks, tiles_per_chunk),
            in_specs=[
                pl.BlockSpec((block_rows, LANES), in_map),   # probabilities (f32)
                pl.BlockSpec((block_rows, LANES), in_map),   # targets (bf16)
            ],
            out_specs=[out_spec, out_spec, out_spec],
        ),
        compiler_params=pltpu.CompilerParams(
            dimension_semantics=("parallel", "arbitrary")),
    )(p2, t2)

    # Tiny epilogue reduction + weighted combine in plain JAX.
    num_pos = jnp.sum(pos_p)
    ploss = jnp.sum(ploss_p)
    total = jnp.sum(tot_p)
    num_neg = jnp.float32(n) - num_pos
    nloss = total - ploss
    # weight = 1 for negatives, num_neg/num_pos for positives (inf/NaN if no positives,
    # identical to the PyTorch module's behavior).
    return (nloss + (num_neg / num_pos) * ploss) / jnp.float32(n)


def _reference(_input, target):
    """Pure-JAX reference matching the PyTorch module."""
    num_pos = target.sum()
    num_neg = (1.0 - target).sum()
    w = jnp.where(target == 1.0, num_neg / num_pos, 1.0).reshape(-1, 1)
    t = target.reshape(-1, 1)
    log_p = jnp.maximum(jnp.log(_input), -100.0)
    log_1mp = jnp.maximum(jnp.log(1.0 - _input), -100.0)
    loss = -(t * log_p + (1.0 - t) * log_1mp)
    return jnp.mean(w * loss)


if __name__ == "__main__":
    key = jax.random.PRNGKey(0)
    # Two sizes: a small ragged one (single tile + masking-by-padding) and a larger
    # one that exercises multiple tiles, both chunks and tail padding.
    for N in (2000, 300_000):
        k1, k2, key = jax.random.split(key, 3)
        _input = jax.nn.sigmoid(jax.random.normal(k1, (N, 1), jnp.float32))
        target = (jax.random.uniform(k2, (N,)) > 0.7).astype(jnp.float32)

        loss = jax.block_until_ready(weighted_bce_loss(_input, target))
        ref = jax.block_until_ready(_reference(_input, target))

        assert jnp.isfinite(loss), "kernel produced non-finite loss"
        assert jnp.allclose(loss, ref, rtol=1e-5, atol=1e-5), (N, loss, ref)

    print("KERNEL_OK")
</pallas_src>

<mosaic_0001>
module attributes {stable_mosaic.version = 11 : i64} {
  func.func @_wbce_kernel(%arg0: i32, %arg1: i32, %arg2: memref<16x128xf32, #tpu.memory_space<vmem>>, %arg3: memref<16x128xbf16, #tpu.memory_space<vmem>>, %arg4: memref<1x16x128xf32, #tpu.memory_space<vmem>>, %arg5: memref<1x16x128xf32, #tpu.memory_space<vmem>>, %arg6: memref<1x16x128xf32, #tpu.memory_space<vmem>>) attributes {dimension_semantics = [#tpu.dimension_semantics<parallel>, #tpu.dimension_semantics<arbitrary>], iteration_bounds = array<i64: 1, 1>, scalar_prefetch = 0 : i64, scratch_operands = 0 : i64, tpu.core_type = #tpu.core_type<tc>, window_params = [{transform_indices = @transform_0, window_bounds = array<i64: 16, 128>}, {transform_indices = @transform_1, window_bounds = array<i64: 16, 128>}, {transform_indices = @transform_2, window_bounds = array<i64: 1, 16, 128>}, {transform_indices = @transform_3, window_bounds = array<i64: 1, 16, 128>}, {transform_indices = @transform_4, window_bounds = array<i64: 1, 16, 128>}]} {
    %c0_i32 = arith.constant 0 : i32
    %0 = arith.cmpi eq, %arg1, %c0_i32 : i32
    %1 = arith.extui %0 : i1 to i32
    %c0_i32_0 = arith.constant 0 : i32
    %2 = arith.cmpi ne, %1, %c0_i32_0 : i32
    scf.if %2 {
      %cst_26 = arith.constant 0.000000e+00 : f32
      %36 = vector.broadcast %cst_26 : f32 to vector<16x128xf32>
      %c0_27 = arith.constant 0 : index
      %c0_28 = arith.constant 0 : index
      %c0_29 = arith.constant 0 : index
      %37 = vector.load %arg4[%c0_27, %c0_28, %c0_29] : memref<1x16x128xf32, #tpu.memory_space<vmem>>, vector<1x16x128xf32>
      %38 = vector.shape_cast %37 : vector<1x16x128xf32> to vector<16x128xf32>
      %39 = vector.shape_cast %36 : vector<16x128xf32> to vector<1x16x128xf32>
      tpu.vector_store %arg4[%c0_27, %c0_28, %c0_29], %39 {strides = array<i32>} : memref<1x16x128xf32, #tpu.memory_space<vmem>>, vector<1x16x128xf32>,
      %cst_30 = arith.constant 0.000000e+00 : f32
      %40 = vector.broadcast %cst_30 : f32 to vector<16x128xf32>
      %c0_31 = arith.constant 0 : index
      %c0_32 = arith.constant 0 : index
      %c0_33 = arith.constant 0 : index
      %41 = vector.load %arg5[%c0_31, %c0_32, %c0_33] : memref<1x16x128xf32, #tpu.memory_space<vmem>>, vector<1x16x128xf32>
      %42 = vector.shape_cast %41 : vector<1x16x128xf32> to vector<16x128xf32>
      %43 = vector.shape_cast %40 : vector<16x128xf32> to vector<1x16x128xf32>
      tpu.vector_store %arg5[%c0_31, %c0_32, %c0_33], %43 {strides = array<i32>} : memref<1x16x128xf32, #tpu.memory_space<vmem>>, vector<1x16x128xf32>,
      %cst_34 = arith.constant 0.000000e+00 : f32
      %44 = vector.broadcast %cst_34 : f32 to vector<16x128xf32>
      %c0_35 = arith.constant 0 : index
      %c0_36 = arith.constant 0 : index
      %c0_37 = arith.constant 0 : index
      %45 = vector.load %arg6[%c0_35, %c0_36, %c0_37] : memref<1x16x128xf32, #tpu.memory_space<vmem>>, vector<1x16x128xf32>
      %46 = vector.shape_cast %45 : vector<1x16x128xf32> to vector<16x128xf32>
      %47 = vector.shape_cast %44 : vector<16x128xf32> to vector<1x16x128xf32>
      tpu.vector_store %arg6[%c0_35, %c0_36, %c0_37], %47 {strides = array<i32>} : memref<1x16x128xf32, #tpu.memory_space<vmem>>, vector<1x16x128xf32>,
    } else {
    }
    %c0 = arith.constant 0 : index
    %c0_1 = arith.constant 0 : index
    %3 = vector.load %arg2[%c0, %c0_1] : memref<16x128xf32, #tpu.memory_space<vmem>>, vector<16x128xf32>
    %c0_2 = arith.constant 0 : index
    %c0_3 = arith.constant 0 : index
    %4 = vector.load %arg3[%c0_2, %c0_3] : memref<16x128xbf16, #tpu.memory_space<vmem>>, vector<16x128xbf16>
    %5 = arith.extf %4 : vector<16x128xbf16> to vector<16x128xf32>
    %cst = arith.constant 5.000000e-01 : f32
    %6 = vector.broadcast %cst : f32 to vector<16x128xf32>
    %7 = arith.cmpf ogt, %5, %6 : vector<16x128xf32>
    %cst_4 = arith.constant 1.000000e+00 : f32
    %8 = vector.broadcast %cst_4 : f32 to vector<16x128xf32>
    %9 = arith.subf %8, %3 : vector<16x128xf32>
    %10 = arith.select %7, %3, %9 : vector<16x128xi1>, vector<16x128xf32>
    %11 = math.log %10 : vector<16x128xf32>
    %cst_5 = arith.constant -1.000000e+02 : f32
    %12 = vector.broadcast %cst_5 : f32 to vector<16x128xf32>
    %13 = arith.maximumf %11, %12 : vector<16x128xf32>
    %cst_6 = arith.constant 0.000000e+00 : f32
    %14 = vector.broadcast %cst_6 : f32 to vector<16x128xf32>
    %15 = arith.subf %14, %13 : vector<16x128xf32>
    %c0_7 = arith.constant 0 : index
    %c0_8 = arith.constant 0 : index
    %c0_9 = arith.constant 0 : index
    %16 = vector.load %arg4[%c0_7, %c0_8, %c0_9] : memref<1x16x128xf32, #tpu.memory_space<vmem>>, vector<1x16x128xf32>
    %17 = vector.shape_cast %16 : vector<1x16x128xf32> to vector<16x128xf32>
    %18 = arith.addf %17, %5 : vector<16x128xf32>
    %c0_10 = arith.constant 0 : index
    %c0_11 = arith.constant 0 : index
    %c0_12 = arith.constant 0 : index
    %19 = vector.load %arg4[%c0_10, %c0_11, %c0_12] : memref<1x16x128xf32, #tpu.memory_space<vmem>>, vector<1x16x128xf32>
    %20 = vector.shape_cast %19 : vector<1x16x128xf32> to vector<16x128xf32>
    %21 = vector.shape_cast %18 : vector<16x128xf32> to vector<1x16x128xf32>
    tpu.vector_store %arg4[%c0_10, %c0_11, %c0_12], %21 {strides = array<i32>} : memref<1x16x128xf32, #tpu.memory_space<vmem>>, vector<1x16x128xf32>,
    %c0_13 = arith.constant 0 : index
    %c0_14 = arith.constant 0 : index
    %c0_15 = arith.constant 0 : index
    %22 = vector.load %arg5[%c0_13, %c0_14, %c0_15] : memref<1x16x128xf32, #tpu.memory_space<vmem>>, vector<1x16x128xf32>
    %23 = vector.shape_cast %22 : vector<1x16x128xf32> to vector<16x128xf32>
    %cst_16 = arith.constant 0.000000e+00 : f32
    %24 = vector.broadcast %cst_16 : f32 to vector<16x128xf32>
    %25 = arith.select %7, %15, %24 : vector<16x128xi1>, vector<16x128xf32>
    %26 = arith.addf %23, %25 : vector<16x128xf32>
    %c0_17 = arith.constant 0 : index
    %c0_18 = arith.constant 0 : index
    %c0_19 = arith.constant 0 : index
    %27 = vector.load %arg5[%c0_17, %c0_18, %c0_19] : memref<1x16x128xf32, #tpu.memory_space<vmem>>, vector<1x16x128xf32>
    %28 = vector.shape_cast %27 : vector<1x16x128xf32> to vector<16x128xf32>
    %29 = vector.shape_cast %26 : vector<16x128xf32> to vector<1x16x128xf32>
    tpu.vector_store %arg5[%c0_17, %c0_18, %c0_19], %29 {strides = array<i32>} : memref<1x16x128xf32, #tpu.memory_space<vmem>>, vector<1x16x128xf32>,
    %c0_20 = arith.constant 0 : index
    %c0_21 = arith.constant 0 : index
    %c0_22 = arith.constant 0 : index
    %30 = vector.load %arg6[%c0_20, %c0_21, %c0_22] : memref<1x16x128xf32, #tpu.memory_space<vmem>>, vector<1x16x128xf32>
    %31 = vector.shape_cast %30 : vector<1x16x128xf32> to vector<16x128xf32>
    %32 = arith.addf %31, %15 : vector<16x128xf32>
    %c0_23 = arith.constant 0 : index
    %c0_24 = arith.constant 0 : index
    %c0_25 = arith.constant 0 : index
    %33 = vector.load %arg6[%c0_23, %c0_24, %c0_25] : memref<1x16x128xf32, #tpu.memory_space<vmem>>, vector<1x16x128xf32>
    %34 = vector.shape_cast %33 : vector<1x16x128xf32> to vector<16x128xf32>
    %35 = vector.shape_cast %32 : vector<16x128xf32> to vector<1x16x128xf32>
    tpu.vector_store %arg6[%c0_23, %c0_24, %c0_25], %35 {strides = array<i32>} : memref<1x16x128xf32, #tpu.memory_space<vmem>>, vector<1x16x128xf32>,
    return
  }
  func.func @transform_0(%arg0: i32, %arg1: i32) -> (i32, i32) {
    %c1_i32 = arith.constant 1 : i32
    %0 = arith.muli %arg0, %c1_i32 : i32
    %1 = arith.addi %0, %arg1 : i32
    %c0_i32 = arith.constant 0 : i32
    %c0_i32_0 = arith.constant 0 : i32
    return %1, %c0_i32 : i32, i32
  }
  func.func @transform_1(%arg0: i32, %arg1: i32) -> (i32, i32) {
    %c1_i32 = arith.constant 1 : i32
    %0 = arith.muli %arg0, %c1_i32 : i32
    %1 = arith.addi %0, %arg1 : i32
    %c0_i32 = arith.constant 0 : i32
    %c0_i32_0 = arith.constant 0 : i32
    return %1, %c0_i32 : i32, i32
  }
  func.func @transform_2(%arg0: i32, %arg1: i32) -> (i32, i32, i32) {
    %c0_i32 = arith.constant 0 : i32
    %c0_i32_0 = arith.constant 0 : i32
    %c0_i32_1 = arith.constant 0 : i32
    return %arg0, %c0_i32, %c0_i32_0 : i32, i32, i32
  }
  func.func @transform_3(%arg0: i32, %arg1: i32) -> (i32, i32, i32) {
    %c0_i32 = arith.constant 0 : i32
    %c0_i32_0 = arith.constant 0 : i32
    %c0_i32_1 = arith.constant 0 : i32
    return %arg0, %c0_i32, %c0_i32_0 : i32, i32, i32
  }
  func.func @transform_4(%arg0: i32, %arg1: i32) -> (i32, i32, i32) {
    %c0_i32 = arith.constant 0 : i32
    %c0_i32_0 = arith.constant 0 : i32
    %c0_i32_1 = arith.constant 0 : i32
    return %arg0, %c0_i32, %c0_i32_0 : i32, i32, i32
  }
}

</mosaic_0001>

<bundles_post_ra>
// kernel: weighted_bce_loss.1
= control target key start
LH: loop header
LB: loop body
LE: loop exit
PB: predicated region body
PF: predicated region fallthrough
CT: control target
= control target key end

     0   :  { %s209_s1 = inlined_call_operand.vmem [shape: bf16[16,128], index: 1, kind: input, shape index: {}]   ;;  %s210_s0 = inlined_call_operand.vmem [shape: f32[16,128], index: 0, kind: input, shape index: {}]   ;;  %s211_s2 = inlined_call_operand.vmem [shape: f32[1,16,128], index: 2, kind: output, shape index: {0}]   ;;  %s212_s4 = inlined_call_operand.vmem [shape: f32[1,16,128], index: 4, kind: output, shape index: {2}]   ;;  %s213_s3 = inlined_call_operand.vmem [shape: f32[1,16,128], index: 3, kind: output, shape index: {1}]  }
   0x1   :  { %v133_v0 = vld [vmem:[%s209_s1] sm:$0xff]   ;;  %v69_v2 = vld [vmem:[%s210_s0 + $0x8] sm:$0xff] }
   0x2   :  { %v68_v1 = vld [vmem:[%s210_s0] sm:$0xff]  ;;  %v134_v3 = vunpack.c.l.bf16 %v133_v0  ;;  %v135_v4 = vunpack.c.h.bf16 %v133_v0  ;;  %v77_v6 = vsub.f32 1.0, %v69_v2 }
   0x3   :  { %v76_v5 = vsub.f32 1.0, %v68_v1 }
   0x4   :  { %vm175_vm0 = vcmp.gt.f32.partialorder %v134_v3, 0.5  ;;  %vm179_vm1 = vcmp.gt.f32.partialorder %v135_v4, 0.5  ;;  %92 = vst [vmem:[%s211_s2] sm:$0xff] %v134_v3  ;;  %93 = vst [vmem:[%s211_s2 + $0x8] sm:$0xff] %v135_v4 }
   0x5   :  { %v78_v9 = vsel %vm175_vm0, %v68_v1, %v76_v5  ;;  %v79_v10 = vsel %vm179_vm1, %v69_v2, %v77_v6 }
   0x6   :  { %137 = vlog2.f32 %v78_v9 }
   0x7   :  { %139 = vlog2.f32 %v79_v10 }
  0x13   :  { %v138_v11 = vpop.eup %137 }
  0x14   :  { %v140_v12 = vpop.eup %139  ;;  %v81_v13 = vmul.f32 0.6931472, %v138_v11 }
  0x15   :  { %v83_v14 = vmul.f32 0.6931472, %v140_v12 }
  0x16   :  { %v84_v15 = vmax.f32 %v81_v13, -100.0 }
  0x17   :  { %v85_v16 = vmax.f32 %v83_v14, -100.0 }
  0x18   :  { %v86_v17 = vsub.f32 0.0, %v84_v15 }
  0x19   :  { %v87_v18 = vsub.f32 0.0, %v85_v16 }
  0x1a   :  { %v96_v19 = vsel %vm175_vm0, %v86_v17, 0.0  ;;  %106 = vst [vmem:[%s212_s4] sm:$0xff] %v86_v17 }
  0x1b   :  { %v97_v20 = vsel %vm179_vm1, %v87_v18, 0.0  ;;  %100 = vst [vmem:[%s213_s3] sm:$0xff] %v96_v19  ;;  %107 = vst [vmem:[%s212_s4 + $0x8] sm:$0xff] %v87_v18 }
  0x1c   :  { %101 = vst [vmem:[%s213_s3 + $0x8] sm:$0xff] %v97_v20 }

</bundles_post_ra>
